<compile_context>
chip_gen: v6e
topology: v6e:2x2x1
jax: 0.10.0
libtpu: 0.0.40
codegen_flags: <defaults>
</compile_context>

<pallas_src>
import functools

import numpy as np
import jax
import jax.numpy as jnp
from jax import lax
from jax.experimental import pallas as pl
from jax.experimental.pallas import tpu as pltpu

TEMPERATURE = 0.5
COS_EPS = 1e-8        # torch.nn.CosineSimilarity eps
_NEG = -1e30          # finite "-inf": survives max/exp without producing NaN
_MAX_BLOCK = 256      # f32/bf16 tiles at this size are far below even v7x's VMEM budget


# ---- fused tiled kernel -------------------------------------------------------
def _ntxent_kernel(zjs_r_ref, zis_r_ref, zjs_c_ref, zis_c_ref, out_ref,
                   m_j_ref, l_j_ref, m_i_ref, l_i_ref, *,
                   inv_temperature, use_cosine, matmul_dtype,
                   valid_rows, has_padding):
    i = pl.program_id(0)                 # row block  ("parallel")
    j = pl.program_id(1)                 # col block  ("arbitrary", innermost)
    n_col = pl.num_programs(1)
    inv_t = jnp.float32(inv_temperature)

    def normalize(x):
        sq = jnp.sum(x * x, axis=1, keepdims=True)
        # NOTE: torch.nn.CosineSimilarity clamps the *product* of norms at eps; we
        # clamp each row norm at eps (identical for non-degenerate inputs).
        return x * lax.rsqrt(jnp.maximum(sq, jnp.float32(COS_EPS * COS_EPS)))

    zjs_r = zjs_r_ref[...].astype(jnp.float32)
    zis_r = zis_r_ref[...].astype(jnp.float32)
    zjs_c = zjs_c_ref[...].astype(jnp.float32)
    zis_c = zis_c_ref[...].astype(jnp.float32)
    if use_cosine:
        zjs_r = normalize(zjs_r)
        zis_r = normalize(zis_r)
        zjs_c = normalize(zjs_c)
        zis_c = normalize(zis_c)

    # Fold 1/T into the streamed column tiles (O(tn*D) muls instead of O(tm*tn) per
    # sim block), then cast operands for the MXU; accumulate in f32.
    zjs_rm = zjs_r.astype(matmul_dtype)
    zis_rm = zis_r.astype(matmul_dtype)
    zjs_cm = (zjs_c * inv_t).astype(matmul_dtype)
    zis_cm = (zis_c * inv_t).astype(matmul_dtype)

    dn = (((1,), (1,)), ((), ()))        # contract the feature dim: A @ B.T on the MXU
    s_jj = lax.dot_general(zjs_rm, zjs_cm, dn, preferred_element_type=jnp.float32)
    s_ji = lax.dot_general(zjs_rm, zis_cm, dn, preferred_element_type=jnp.float32)
    s_ij = lax.dot_general(zis_rm, zjs_cm, dn, preferred_element_type=jnp.float32)
    s_ii = lax.dot_general(zis_rm, zis_cm, dn, preferred_element_type=jnp.float32)

    tm, tn = s_jj.shape
    r_loc = lax.broadcasted_iota(jnp.int32, (tm, tn), 0)
    c_loc = lax.broadcasted_iota(jnp.int32, (tm, tn), 1)

    # Self-similarity mask: scalar-predicated so it only bites on diagonal tiles.
    diag = jnp.logical_and(i == j, r_loc == c_loc)
    s_jj = jnp.where(diag, _NEG, s_jj)
    s_ii = jnp.where(diag, _NEG, s_ii)

    if has_padding:
        # Mask out padded columns (rows >= valid_rows in each half).
        col_ok = (j * tn + c_loc) < valid_rows
        s_jj = jnp.where(col_ok, s_jj, _NEG)
        s_ji = jnp.where(col_ok, s_ji, _NEG)
        s_ij = jnp.where(col_ok, s_ij, _NEG)
        s_ii = jnp.where(col_ok, s_ii, _NEG)

    @pl.when(j == 0)
    def _init():
        m_j_ref[...] = jnp.full(m_j_ref.shape, _NEG, jnp.float32)
        m_i_ref[...] = jnp.full(m_i_ref.shape, _NEG, jnp.float32)
        l_j_ref[...] = jnp.zeros(l_j_ref.shape, jnp.float32)
        l_i_ref[...] = jnp.zeros(l_i_ref.shape, jnp.float32)

    def online_update(m_ref, l_ref, a, b):
        m_old = m_ref[...]
        m_new = jnp.maximum(m_old,
                            jnp.maximum(jnp.max(a, axis=1, keepdims=True),
                                        jnp.max(b, axis=1, keepdims=True)))
        p = (jnp.sum(jnp.exp(a - m_new), axis=1, keepdims=True) +
             jnp.sum(jnp.exp(b - m_new), axis=1, keepdims=True))
        l_ref[...] = jnp.exp(m_old - m_new) * l_ref[...] + p
        m_ref[...] = m_new

    online_update(m_j_ref, l_j_ref, s_jj, s_ji)   # rows coming from the zjs half
    online_update(m_i_ref, l_i_ref, s_ij, s_ii)   # rows coming from the zis half

    @pl.when(j == n_col - 1)
    def _finalize():
        # Positive pair <zjs_k, zis_k> (the ±B off-diagonals of the full sim matrix),
        # taken directly from the resident (normalized) row tiles.
        pos = jnp.sum(zjs_r * zis_r, axis=1, keepdims=True) * inv_t
        lse_j = m_j_ref[...] + jnp.log(l_j_ref[...])
        lse_i = m_i_ref[...] + jnp.log(l_i_ref[...])
        out_ref[:, 0:1] = lse_j - pos   # per-row CE for zjs-half rows
        out_ref[:, 1:2] = lse_i - pos   # per-row CE for zis-half rows


# ---- wrapper -----------------------------------------------------------------
def ntxent_loss(zis, zjs, *, temperature=TEMPERATURE, use_cosine=True,
                matmul_dtype=jnp.bfloat16, block_size=None):
    """NTXentLoss.forward(zis, zjs) -> scalar loss (sum CE / 2B)."""
    assert zis.ndim == 2 and zis.shape == zjs.shape
    b, d = zis.shape

    if block_size is None:
        block = b if b <= _MAX_BLOCK else _MAX_BLOCK
    else:
        block = int(block_size)
    nb = pl.cdiv(b, block)
    if nb > 1 and block % 8 != 0:
        raise ValueError("block_size must be a multiple of 8 when tiling")
    bp = nb * block
    pad = bp - b
    if pad:
        zis = jnp.pad(zis, ((0, pad), (0, 0)))
        zjs = jnp.pad(zjs, ((0, pad), (0, 0)))

    kernel = functools.partial(
        _ntxent_kernel,
        inv_temperature=1.0 / float(temperature),
        use_cosine=bool(use_cosine),
        matmul_dtype=matmul_dtype,
        valid_rows=b,
        has_padding=bool(pad),
    )

    row_spec = pl.BlockSpec((block, d), lambda i, j: (i, 0))   # resident across j
    col_spec = pl.BlockSpec((block, d), lambda i, j: (j, 0))   # streamed / pipelined

    per_row = pl.pallas_call(
        kernel,
        out_shape=jax.ShapeDtypeStruct((bp, 2), jnp.float32),
        grid_spec=pltpu.PrefetchScalarGridSpec(
            num_scalar_prefetch=0,
            grid=(nb, nb),
            in_specs=[row_spec, row_spec, col_spec, col_spec],
            out_specs=pl.BlockSpec((block, 2), lambda i, j: (i, 0)),
            scratch_shapes=[
                pltpu.VMEM((block, 1), jnp.float32),   # m  (zjs-half rows)
                pltpu.VMEM((block, 1), jnp.float32),   # l  (zjs-half rows)
                pltpu.VMEM((block, 1), jnp.float32),   # m  (zis-half rows)
                pltpu.VMEM((block, 1), jnp.float32),   # l  (zis-half rows)
            ]),
        compiler_params=pltpu.CompilerParams(
            dimension_semantics=("parallel", "arbitrary")),
    )(zjs, zis, zjs, zis)

    # Tiny final reduction (discard padded rows): sum of per-row CE / (2B).
    return jnp.sum(per_row[:b]) / (2 * b)


# ---- numpy reference (mirrors the PyTorch module line by line) ----------------
def _ref_ntxent_np(zis, zjs, temperature, use_cosine, batch_size):
    zis = np.asarray(zis, dtype=np.float64)
    zjs = np.asarray(zjs, dtype=np.float64)
    n = 2 * batch_size
    rep = np.concatenate([zjs, zis], axis=0)
    if use_cosine:
        nrm = np.linalg.norm(rep, axis=1, keepdims=True)
        sim = (rep @ rep.T) / np.maximum(nrm @ nrm.T, COS_EPS)
    else:
        sim = rep @ rep.T
    l_pos = np.diagonal(sim, offset=batch_size)
    r_pos = np.diagonal(sim, offset=-batch_size)
    positives = np.concatenate([l_pos, r_pos]).reshape(n, 1)
    mask = (1 - (np.eye(n) + np.eye(n, k=-batch_size) + np.eye(n, k=batch_size))).astype(bool)
    negatives = sim[mask].reshape(n, -1)
    logits = np.concatenate([positives, negatives], axis=1) / temperature
    m = logits.max(axis=1, keepdims=True)
    lse = m[:, 0] + np.log(np.exp(logits - m).sum(axis=1))
    loss = np.sum(lse - logits[:, 0])          # CrossEntropyLoss(reduction='sum'), labels=0
    return loss / n


# ---- main ---------------------------------------------------------------------
if __name__ == "__main__":
    key = jax.random.PRNGKey(0)

    #        (B,  D, use_cosine, matmul dtype,  block, rtol, atol)
    cases = [(2, 32, True,       jnp.bfloat16,  None,  5e-2, 5e-2),   # default bf16-MXU path
             (2, 32, True,       jnp.float32,   None,  1e-3, 1e-4),   # tight numerical check
             (2, 32, False,      jnp.float32,   None,  1e-3, 1e-4),   # dot similarity
             (12, 32, True,      jnp.float32,   8,     1e-3, 1e-4),   # tiled grid + padding path
             (12, 32, False,     jnp.float32,   8,     1e-3, 1e-4),
             (12, 32, True,      jnp.bfloat16,  8,     5e-2, 5e-2)]

    for b, d, use_cos, mm_dtype, blk, rtol, atol in cases:
        key, k_i, k_j = jax.random.split(key, 3)
        zis = jax.random.normal(k_i, (b, d), dtype=jnp.float32)
        zjs = jax.random.normal(k_j, (b, d), dtype=jnp.float32)

        loss = jax.block_until_ready(
            ntxent_loss(zis, zjs, temperature=TEMPERATURE, use_cosine=use_cos,
                        matmul_dtype=mm_dtype, block_size=blk))
        ref = _ref_ntxent_np(zis, zjs, TEMPERATURE, use_cos, b)

        assert np.isfinite(float(loss)), ("non-finite loss", b, use_cos, float(loss))
        assert np.allclose(float(loss), ref, rtol=rtol, atol=atol), (
            "mismatch", b, use_cos, str(mm_dtype), float(loss), float(ref))

    print("KERNEL_OK")
</pallas_src>

<mosaic_0001>
module attributes {stable_mosaic.version = 11 : i64} {
  func.func @_ntxent_kernel(%arg0: i32, %arg1: i32, %arg2: memref<2x32xf32, #tpu.memory_space<vmem>>, %arg3: memref<2x32xf32, #tpu.memory_space<vmem>>, %arg4: memref<2x32xf32, #tpu.memory_space<vmem>>, %arg5: memref<2x32xf32, #tpu.memory_space<vmem>>, %arg6: memref<2x2xf32, #tpu.memory_space<vmem>>, %arg7: memref<2x1xf32, #tpu.memory_space<vmem>>, %arg8: memref<2x1xf32, #tpu.memory_space<vmem>>, %arg9: memref<2x1xf32, #tpu.memory_space<vmem>>, %arg10: memref<2x1xf32, #tpu.memory_space<vmem>>) attributes {dimension_semantics = [#tpu.dimension_semantics<parallel>, #tpu.dimension_semantics<arbitrary>], iteration_bounds = array<i64: 1, 1>, scalar_prefetch = 0 : i64, scratch_operands = 4 : i64, tpu.core_type = #tpu.core_type<tc>, window_params = [{transform_indices = @transform_0, window_bounds = array<i64: 2, 32>}, {transform_indices = @transform_1, window_bounds = array<i64: 2, 32>}, {transform_indices = @transform_2, window_bounds = array<i64: 2, 32>}, {transform_indices = @transform_3, window_bounds = array<i64: 2, 32>}, {transform_indices = @transform_4, window_bounds = array<i64: 2, 2>}]} {
    %c0 = arith.constant 0 : index
    %c0_0 = arith.constant 0 : index
    %0 = vector.load %arg2[%c0, %c0_0] : memref<2x32xf32, #tpu.memory_space<vmem>>, vector<2x32xf32>
    %c0_1 = arith.constant 0 : index
    %c0_2 = arith.constant 0 : index
    %1 = vector.load %arg3[%c0_1, %c0_2] : memref<2x32xf32, #tpu.memory_space<vmem>>, vector<2x32xf32>
    %c0_3 = arith.constant 0 : index
    %c0_4 = arith.constant 0 : index
    %2 = vector.load %arg4[%c0_3, %c0_4] : memref<2x32xf32, #tpu.memory_space<vmem>>, vector<2x32xf32>
    %c0_5 = arith.constant 0 : index
    %c0_6 = arith.constant 0 : index
    %3 = vector.load %arg5[%c0_5, %c0_6] : memref<2x32xf32, #tpu.memory_space<vmem>>, vector<2x32xf32>
    %4 = arith.mulf %0, %0 : vector<2x32xf32>
    %cst = arith.constant dense<0.000000e+00> : vector<2xf32>
    %5 = vector.multi_reduction <add>, %4, %cst [1] : vector<2x32xf32> to vector<2xf32>
    %6 = vector.shape_cast %5 : vector<2xf32> to vector<2x1xf32>
    %cst_7 = arith.constant 1.000000e-16 : f32
    %7 = vector.broadcast %cst_7 : f32 to vector<2x1xf32>
    %8 = arith.maximumf %6, %7 : vector<2x1xf32>
    %9 = math.rsqrt %8 : vector<2x1xf32>
    %10 = vector.broadcast %9 : vector<2x1xf32> to vector<2x32xf32>
    %11 = arith.mulf %0, %10 : vector<2x32xf32>
    %12 = arith.mulf %1, %1 : vector<2x32xf32>
    %cst_8 = arith.constant dense<0.000000e+00> : vector<2xf32>
    %13 = vector.multi_reduction <add>, %12, %cst_8 [1] : vector<2x32xf32> to vector<2xf32>
    %14 = vector.shape_cast %13 : vector<2xf32> to vector<2x1xf32>
    %cst_9 = arith.constant 1.000000e-16 : f32
    %15 = vector.broadcast %cst_9 : f32 to vector<2x1xf32>
    %16 = arith.maximumf %14, %15 : vector<2x1xf32>
    %17 = math.rsqrt %16 : vector<2x1xf32>
    %18 = vector.broadcast %17 : vector<2x1xf32> to vector<2x32xf32>
    %19 = arith.mulf %1, %18 : vector<2x32xf32>
    %20 = arith.mulf %2, %2 : vector<2x32xf32>
    %cst_10 = arith.constant dense<0.000000e+00> : vector<2xf32>
    %21 = vector.multi_reduction <add>, %20, %cst_10 [1] : vector<2x32xf32> to vector<2xf32>
    %22 = vector.shape_cast %21 : vector<2xf32> to vector<2x1xf32>
    %cst_11 = arith.constant 1.000000e-16 : f32
    %23 = vector.broadcast %cst_11 : f32 to vector<2x1xf32>
    %24 = arith.maximumf %22, %23 : vector<2x1xf32>
    %25 = math.rsqrt %24 : vector<2x1xf32>
    %26 = vector.broadcast %25 : vector<2x1xf32> to vector<2x32xf32>
    %27 = arith.mulf %2, %26 : vector<2x32xf32>
    %28 = arith.mulf %3, %3 : vector<2x32xf32>
    %cst_12 = arith.constant dense<0.000000e+00> : vector<2xf32>
    %29 = vector.multi_reduction <add>, %28, %cst_12 [1] : vector<2x32xf32> to vector<2xf32>
    %30 = vector.shape_cast %29 : vector<2xf32> to vector<2x1xf32>
    %cst_13 = arith.constant 1.000000e-16 : f32
    %31 = vector.broadcast %cst_13 : f32 to vector<2x1xf32>
    %32 = arith.maximumf %30, %31 : vector<2x1xf32>
    %33 = math.rsqrt %32 : vector<2x1xf32>
    %34 = vector.broadcast %33 : vector<2x1xf32> to vector<2x32xf32>
    %35 = arith.mulf %3, %34 : vector<2x32xf32>
    %36 = arith.truncf %11 : vector<2x32xf32> to vector<2x32xbf16>
    %37 = arith.truncf %19 : vector<2x32xf32> to vector<2x32xbf16>
    %cst_14 = arith.constant 2.000000e+00 : f32
    %38 = vector.broadcast %cst_14 : f32 to vector<2x32xf32>
    %39 = arith.mulf %27, %38 : vector<2x32xf32>
    %40 = arith.truncf %39 : vector<2x32xf32> to vector<2x32xbf16>
    %cst_15 = arith.constant 2.000000e+00 : f32
    %41 = vector.broadcast %cst_15 : f32 to vector<2x32xf32>
    %42 = arith.mulf %35, %41 : vector<2x32xf32>
    %43 = arith.truncf %42 : vector<2x32xf32> to vector<2x32xbf16>
    %cst_16 = arith.constant dense<0.000000e+00> : vector<2x2xf32>
    %44 = tpu.matmul %36, %40, %cst_16 {dimension_numbers = #tpu.dot_dimension_numbers<[1], [1], [0], [0], [0, 0, 1, 0], [], []>} : vector<2x32xbf16>, vector<2x32xbf16>, vector<2x2xf32> -> vector<2x2xf32>
    %cst_17 = arith.constant dense<0.000000e+00> : vector<2x2xf32>
    %45 = tpu.matmul %36, %43, %cst_17 {dimension_numbers = #tpu.dot_dimension_numbers<[1], [1], [0], [0], [0, 0, 1, 0], [], []>} : vector<2x32xbf16>, vector<2x32xbf16>, vector<2x2xf32> -> vector<2x2xf32>
    %cst_18 = arith.constant dense<0.000000e+00> : vector<2x2xf32>
    %46 = tpu.matmul %37, %40, %cst_18 {dimension_numbers = #tpu.dot_dimension_numbers<[1], [1], [0], [0], [0, 0, 1, 0], [], []>} : vector<2x32xbf16>, vector<2x32xbf16>, vector<2x2xf32> -> vector<2x2xf32>
    %cst_19 = arith.constant dense<0.000000e+00> : vector<2x2xf32>
    %47 = tpu.matmul %37, %43, %cst_19 {dimension_numbers = #tpu.dot_dimension_numbers<[1], [1], [0], [0], [0, 0, 1, 0], [], []>} : vector<2x32xbf16>, vector<2x32xbf16>, vector<2x2xf32> -> vector<2x2xf32>
    %48 = tpu.iota {dimensions = array<i32: 0>} : vector<2x2xi32>
    %49 = tpu.iota {dimensions = array<i32: 1>} : vector<2x2xi32>
    %50 = arith.cmpi eq, %arg0, %arg1 : i32
    %51 = arith.cmpi eq, %48, %49 : vector<2x2xi32>
    %52 = vector.broadcast %50 : i1 to vector<2x2xi1>
    %53 = arith.andi %52, %51 : vector<2x2xi1>
    %cst_20 = arith.constant -1.000000e+30 : f32
    %54 = vector.broadcast %cst_20 : f32 to vector<2x2xf32>
    %55 = arith.select %53, %54, %44 : vector<2x2xi1>, vector<2x2xf32>
    %cst_21 = arith.constant -1.000000e+30 : f32
    %56 = vector.broadcast %cst_21 : f32 to vector<2x2xf32>
    %57 = arith.select %53, %56, %47 : vector<2x2xi1>, vector<2x2xf32>
    %c0_i32 = arith.constant 0 : i32
    %58 = arith.cmpi eq, %arg1, %c0_i32 : i32
    %59 = arith.extui %58 : i1 to i32
    %c0_i32_22 = arith.constant 0 : i32
    %60 = arith.cmpi ne, %59, %c0_i32_22 : i32
    scf.if %60 {
      %cst_50 = arith.constant -1.000000e+30 : f32
      %114 = vector.broadcast %cst_50 : f32 to vector<2x1xf32>
      %c0_51 = arith.constant 0 : index
      %c0_52 = arith.constant 0 : index
      %115 = vector.load %arg7[%c0_51, %c0_52] : memref<2x1xf32, #tpu.memory_space<vmem>>, vector<2x1xf32>
      tpu.vector_store %arg7[%c0_51, %c0_52], %114 {strides = array<i32>} : memref<2x1xf32, #tpu.memory_space<vmem>>, vector<2x1xf32>,
      %cst_53 = arith.constant -1.000000e+30 : f32
      %116 = vector.broadcast %cst_53 : f32 to vector<2x1xf32>
      %c0_54 = arith.constant 0 : index
      %c0_55 = arith.constant 0 : index
      %117 = vector.load %arg9[%c0_54, %c0_55] : memref<2x1xf32, #tpu.memory_space<vmem>>, vector<2x1xf32>
      tpu.vector_store %arg9[%c0_54, %c0_55], %116 {strides = array<i32>} : memref<2x1xf32, #tpu.memory_space<vmem>>, vector<2x1xf32>,
      %cst_56 = arith.constant 0.000000e+00 : f32
      %118 = vector.broadcast %cst_56 : f32 to vector<2x1xf32>
      %c0_57 = arith.constant 0 : index
      %c0_58 = arith.constant 0 : index
      %119 = vector.load %arg8[%c0_57, %c0_58] : memref<2x1xf32, #tpu.memory_space<vmem>>, vector<2x1xf32>
      tpu.vector_store %arg8[%c0_57, %c0_58], %118 {strides = array<i32>} : memref<2x1xf32, #tpu.memory_space<vmem>>, vector<2x1xf32>,
      %cst_59 = arith.constant 0.000000e+00 : f32
      %120 = vector.broadcast %cst_59 : f32 to vector<2x1xf32>
      %c0_60 = arith.constant 0 : index
      %c0_61 = arith.constant 0 : index
      %121 = vector.load %arg10[%c0_60, %c0_61] : memref<2x1xf32, #tpu.memory_space<vmem>>, vector<2x1xf32>
      tpu.vector_store %arg10[%c0_60, %c0_61], %120 {strides = array<i32>} : memref<2x1xf32, #tpu.memory_space<vmem>>, vector<2x1xf32>,
    } else {
    }
    %c0_23 = arith.constant 0 : index
    %c0_24 = arith.constant 0 : index
    %61 = vector.load %arg7[%c0_23, %c0_24] : memref<2x1xf32, #tpu.memory_space<vmem>>, vector<2x1xf32>
    %cst_25 = arith.constant dense<0xFF800000> : vector<2xf32>
    %62 = vector.multi_reduction <maximumf>, %55, %cst_25 [1] : vector<2x2xf32> to vector<2xf32>
    %63 = vector.shape_cast %62 : vector<2xf32> to vector<2x1xf32>
    %cst_26 = arith.constant dense<0xFF800000> : vector<2xf32>
    %64 = vector.multi_reduction <maximumf>, %45, %cst_26 [1] : vector<2x2xf32> to vector<2xf32>
    %65 = vector.shape_cast %64 : vector<2xf32> to vector<2x1xf32>
    %66 = arith.maximumf %63, %65 : vector<2x1xf32>
    %67 = arith.maximumf %61, %66 : vector<2x1xf32>
    %68 = vector.broadcast %67 : vector<2x1xf32> to vector<2x2xf32>
    %69 = arith.subf %55, %68 : vector<2x2xf32>
    %70 = math.exp %69 : vector<2x2xf32>
    %cst_27 = arith.constant dense<0.000000e+00> : vector<2xf32>
    %71 = vector.multi_reduction <add>, %70, %cst_27 [1] : vector<2x2xf32> to vector<2xf32>
    %72 = vector.shape_cast %71 : vector<2xf32> to vector<2x1xf32>
    %73 = vector.broadcast %67 : vector<2x1xf32> to vector<2x2xf32>
    %74 = arith.subf %45, %73 : vector<2x2xf32>
    %75 = math.exp %74 : vector<2x2xf32>
    %cst_28 = arith.constant dense<0.000000e+00> : vector<2xf32>
    %76 = vector.multi_reduction <add>, %75, %cst_28 [1] : vector<2x2xf32> to vector<2xf32>
    %77 = vector.shape_cast %76 : vector<2xf32> to vector<2x1xf32>
    %78 = arith.addf %72, %77 : vector<2x1xf32>
    %79 = arith.subf %61, %67 : vector<2x1xf32>
    %80 = math.exp %79 : vector<2x1xf32>
    %c0_29 = arith.constant 0 : index
    %c0_30 = arith.constant 0 : index
    %81 = vector.load %arg8[%c0_29, %c0_30] : memref<2x1xf32, #tpu.memory_space<vmem>>, vector<2x1xf32>
    %82 = arith.mulf %80, %81 : vector<2x1xf32>
    %83 = arith.addf %82, %78 : vector<2x1xf32>
    %c0_31 = arith.constant 0 : index
    %c0_32 = arith.constant 0 : index
    %84 = vector.load %arg8[%c0_31, %c0_32] : memref<2x1xf32, #tpu.memory_space<vmem>>, vector<2x1xf32>
    tpu.vector_store %arg8[%c0_31, %c0_32], %83 {strides = array<i32>} : memref<2x1xf32, #tpu.memory_space<vmem>>, vector<2x1xf32>,
    %c0_33 = arith.constant 0 : index
    %c0_34 = arith.constant 0 : index
    %85 = vector.load %arg7[%c0_33, %c0_34] : memref<2x1xf32, #tpu.memory_space<vmem>>, vector<2x1xf32>
    tpu.vector_store %arg7[%c0_33, %c0_34], %67 {strides = array<i32>} : memref<2x1xf32, #tpu.memory_space<vmem>>, vector<2x1xf32>,
    %c0_35 = arith.constant 0 : index
    %c0_36 = arith.constant 0 : index
    %86 = vector.load %arg9[%c0_35, %c0_36] : memref<2x1xf32, #tpu.memory_space<vmem>>, vector<2x1xf32>
    %cst_37 = arith.constant dense<0xFF800000> : vector<2xf32>
    %87 = vector.multi_reduction <maximumf>, %46, %cst_37 [1] : vector<2x2xf32> to vector<2xf32>
    %88 = vector.shape_cast %87 : vector<2xf32> to vector<2x1xf32>
    %cst_38 = arith.constant dense<0xFF800000> : vector<2xf32>
    %89 = vector.multi_reduction <maximumf>, %57, %cst_38 [1] : vector<2x2xf32> to vector<2xf32>
    %90 = vector.shape_cast %89 : vector<2xf32> to vector<2x1xf32>
    %91 = arith.maximumf %88, %90 : vector<2x1xf32>
    %92 = arith.maximumf %86, %91 : vector<2x1xf32>
    %93 = vector.broadcast %92 : vector<2x1xf32> to vector<2x2xf32>
    %94 = arith.subf %46, %93 : vector<2x2xf32>
    %95 = math.exp %94 : vector<2x2xf32>
    %cst_39 = arith.constant dense<0.000000e+00> : vector<2xf32>
    %96 = vector.multi_reduction <add>, %95, %cst_39 [1] : vector<2x2xf32> to vector<2xf32>
    %97 = vector.shape_cast %96 : vector<2xf32> to vector<2x1xf32>
    %98 = vector.broadcast %92 : vector<2x1xf32> to vector<2x2xf32>
    %99 = arith.subf %57, %98 : vector<2x2xf32>
    %100 = math.exp %99 : vector<2x2xf32>
    %cst_40 = arith.constant dense<0.000000e+00> : vector<2xf32>
    %101 = vector.multi_reduction <add>, %100, %cst_40 [1] : vector<2x2xf32> to vector<2xf32>
    %102 = vector.shape_cast %101 : vector<2xf32> to vector<2x1xf32>
    %103 = arith.addf %97, %102 : vector<2x1xf32>
    %104 = arith.subf %86, %92 : vector<2x1xf32>
    %105 = math.exp %104 : vector<2x1xf32>
    %c0_41 = arith.constant 0 : index
    %c0_42 = arith.constant 0 : index
    %106 = vector.load %arg10[%c0_41, %c0_42] : memref<2x1xf32, #tpu.memory_space<vmem>>, vector<2x1xf32>
    %107 = arith.mulf %105, %106 : vector<2x1xf32>
    %108 = arith.addf %107, %103 : vector<2x1xf32>
    %c0_43 = arith.constant 0 : index
    %c0_44 = arith.constant 0 : index
    %109 = vector.load %arg10[%c0_43, %c0_44] : memref<2x1xf32, #tpu.memory_space<vmem>>, vector<2x1xf32>
    tpu.vector_store %arg10[%c0_43, %c0_44], %108 {strides = array<i32>} : memref<2x1xf32, #tpu.memory_space<vmem>>, vector<2x1xf32>,
    %c0_45 = arith.constant 0 : index
    %c0_46 = arith.constant 0 : index
    %110 = vector.load %arg9[%c0_45, %c0_46] : memref<2x1xf32, #tpu.memory_space<vmem>>, vector<2x1xf32>
    tpu.vector_store %arg9[%c0_45, %c0_46], %92 {strides = array<i32>} : memref<2x1xf32, #tpu.memory_space<vmem>>, vector<2x1xf32>,
    %c0_i32_47 = arith.constant 0 : i32
    %111 = arith.cmpi eq, %arg1, %c0_i32_47 : i32
    %112 = arith.extui %111 : i1 to i32
    %cst_48 = arith.constant 2.000000e+00 : f32
    %c0_i32_49 = arith.constant 0 : i32
    %113 = arith.cmpi ne, %112, %c0_i32_49 : i32
    scf.if %113 {
      %114 = arith.mulf %11, %19 : vector<2x32xf32>
      %cst_50 = arith.constant dense<0.000000e+00> : vector<2xf32>
      %115 = vector.multi_reduction <add>, %114, %cst_50 [1] : vector<2x32xf32> to vector<2xf32>
      %116 = vector.shape_cast %115 : vector<2xf32> to vector<2x1xf32>
      %117 = vector.broadcast %cst_48 : f32 to vector<2x1xf32>
      %118 = arith.mulf %116, %117 : vector<2x1xf32>
      %c0_51 = arith.constant 0 : index
      %c0_52 = arith.constant 0 : index
      %119 = vector.load %arg7[%c0_51, %c0_52] : memref<2x1xf32, #tpu.memory_space<vmem>>, vector<2x1xf32>
      %c0_53 = arith.constant 0 : index
      %c0_54 = arith.constant 0 : index
      %120 = vector.load %arg8[%c0_53, %c0_54] : memref<2x1xf32, #tpu.memory_space<vmem>>, vector<2x1xf32>
      %121 = math.log %120 : vector<2x1xf32>
      %122 = arith.addf %119, %121 : vector<2x1xf32>
      %c0_55 = arith.constant 0 : index
      %c0_56 = arith.constant 0 : index
      %123 = vector.load %arg9[%c0_55, %c0_56] : memref<2x1xf32, #tpu.memory_space<vmem>>, vector<2x1xf32>
      %c0_57 = arith.constant 0 : index
      %c0_58 = arith.constant 0 : index
      %124 = vector.load %arg10[%c0_57, %c0_58] : memref<2x1xf32, #tpu.memory_space<vmem>>, vector<2x1xf32>
      %125 = math.log %124 : vector<2x1xf32>
      %126 = arith.addf %123, %125 : vector<2x1xf32>
      %127 = arith.subf %122, %118 : vector<2x1xf32>
      %c0_59 = arith.constant 0 : index
      %c0_60 = arith.constant 0 : index
      %128 = vector.load %arg6[%c0_59, %c0_60] : memref<2x2xf32, #tpu.memory_space<vmem>>, vector<2x1xf32>
      tpu.vector_store %arg6[%c0_59, %c0_60], %127 {strides = array<i32>} : memref<2x2xf32, #tpu.memory_space<vmem>>, vector<2x1xf32>,
      %129 = arith.subf %126, %118 : vector<2x1xf32>
      %c0_61 = arith.constant 0 : index
      %c1 = arith.constant 1 : index
      %130 = vector.load %arg6[%c0_61, %c1] : memref<2x2xf32, #tpu.memory_space<vmem>>, vector<2x1xf32>
      tpu.vector_store %arg6[%c0_61, %c1], %129 {strides = array<i32>} : memref<2x2xf32, #tpu.memory_space<vmem>>, vector<2x1xf32>,
    } else {
    }
    return
  }
  func.func @transform_0(%arg0: i32, %arg1: i32) -> (i32, i32) {
    %c0_i32 = arith.constant 0 : i32
    %c0_i32_0 = arith.constant 0 : i32
    return %arg0, %c0_i32 : i32, i32
  }
  func.func @transform_1(%arg0: i32, %arg1: i32) -> (i32, i32) {
    %c0_i32 = arith.constant 0 : i32
    %c0_i32_0 = arith.constant 0 : i32
    return %arg0, %c0_i32 : i32, i32
  }
  func.func @transform_2(%arg0: i32, %arg1: i32) -> (i32, i32) {
    %c0_i32 = arith.constant 0 : i32
    %c0_i32_0 = arith.constant 0 : i32
    return %arg1, %c0_i32 : i32, i32
  }
  func.func @transform_3(%arg0: i32, %arg1: i32) -> (i32, i32) {
    %c0_i32 = arith.constant 0 : i32
    %c0_i32_0 = arith.constant 0 : i32
    return %arg1, %c0_i32 : i32, i32
  }
  func.func @transform_4(%arg0: i32, %arg1: i32) -> (i32, i32) {
    %c0_i32 = arith.constant 0 : i32
    %c0_i32_0 = arith.constant 0 : i32
    return %arg0, %c0_i32 : i32, i32
  }
}

</mosaic_0001>

<bundles_post_ra>
// kernel: tpu_custom_call.1
= control target key start
LH: loop header
LB: loop body
LE: loop exit
PB: predicated region body
PF: predicated region fallthrough
CT: control target
= control target key end

     0   :  { %9 = vsyncpa [#allocation7], 0  ;;  %s624_s0 = inlined_call_operand.hbm [shape: f32[2,32], index: 0, kind: input, shape index: {}]   ;;  %s625_s1 = inlined_call_operand.hbm [shape: f32[2,32], index: 1, kind: input, shape index: {}]   ;;  %s626_s2 = inlined_call_operand.vmem [shape: f32[2,32], index: 2, kind: input, shape index: {}]   ;;  %s627_s3 = inlined_call_operand.vmem [shape: f32[2,32], index: 3, kind: input, shape index: {}]   ;;  %s628_s4 = inlined_call_operand.hbm [shape: f32[2,2], index: 4, kind: output, shape index: {}]  }
   0x1   :  { %10 = vsyncpa [#allocation10], 0 }
   0x2   :  { %11 = vsyncpa [#allocation8], 0  ;;  %s527_s15 = smov [#allocation6]   ;;  %s528_s17 = smov [#allocation9]  }
   0x3   :  { %s18_s16 = sshll.u32 %s527_s15, 4  ;;  %s28_s18 = sshll.u32 %s528_s17, 4  ;;  %s19_s16 = int_to_ptr.vmem [resolvable:$true] %s18_s16  ;;  %s29_s18 = int_to_ptr.vmem [resolvable:$true] %s28_s18 }
   0x4   :  { %s469_s19 = scalar_lea.vmem %s19_s16, 32  ;;  %p474_p1 = scmp.lt.s32.totalorder %s19_s16, %s19_s16 }
   0x5   :  { %p470_p0 = scmp.ne.s32.totalorder %s19_s16, %s469_s19  ;;  %p475_p2 = scmp.lt.s32.totalorder %s469_s19, %s469_s19 }
   0x7   :  { %p476_p3 = por %p475_p2, %p474_p1 }
   0x9   :  { %p477_p4 = pnand %p476_p3, %p470_p0 }
   0xb   :  { %480 = shalt.err (!%p477_p4)
}
   0xc   :  { %21 = dma.hbm_to_vmem [thread:$0]  %s624_s0, 32, %s19_s16, [#allocation7]  }
   0xd   :  { %s489_s22 = scalar_lea.vmem %s29_s18, 32  ;;  %p494_p6 = scmp.lt.s32.totalorder %s29_s18, %s29_s18 }
   0xe   :  { %p490_p5 = scmp.ne.s32.totalorder %s29_s18, %s489_s22  ;;  %p495_p7 = scmp.lt.s32.totalorder %s489_s22, %s489_s22 }
  0x10   :  { %p496_p8 = por %p495_p7, %p494_p6 }
  0x12   :  { %p497_p9 = pnand %p496_p8, %p490_p5 }
  0x14   :  { %500 = shalt.err (!%p497_p9)
}
  0x15   :  { %31 = dma.hbm_to_vmem [thread:$0]  %s625_s1, 32, %s29_s18, [#allocation10]  }
  0x16   :  { %521 = dma.done.wait [#allocation7], 32  }
  0x17   :  { %522 = vsyncadd [#allocation7], 4294967264 }
  0x18   :  { %523 = dma.done.wait [#allocation10], 32  }
  0x19   :  { %524 = vsyncadd [#allocation10], 4294967264  ;;  %vm48_vm0 = vcmask 254976   ;;  %v46_v0 = vld [vmem:[%s627_s3] sm:$0x3]  ;;  %v529_v12 = vmov 0.0   ;;  %v255_v39 = vlaneseq }
  0x1a   :  { %v45_v1 = vld [vmem:[%s626_s2] sm:$0x3]  ;;  %v43_v2 = vld [vmem:[#allocation6] sm:$0x3]  ;;  %v69_v3 = vmul.f32 %v46_v0, %v46_v0  ;;  %v44_v6 = vld [vmem:[#allocation9] sm:$0x3]  ;;  %409 = vmatprep.subr.bf16.mxu1 %v529_v12  ;;  %403 = vmatprep.subr.bf16.mxu0 %v529_v12 }
  0x1b   :  { %v62_v4 = vmul.f32 %v45_v1, %v45_v1  ;;  %v47_v5 = vmul.f32 %v43_v2, %v43_v2  ;;  %v55_v7 = vmul.f32 %v44_v6, %v44_v6  ;;  %vm530_vm1 = vmmov 0   ;;  %s533_s1 = smov 1   ;;  %s534_s2 = smov [#allocation11]  }
  0x1c   :  { %v70_v8 = vsel %vm48_vm0, %v69_v3, 0.0  ;;  %411 = vmatprep.mubr.msk.bf16.mxu1 %vm530_vm1, %v529_v12  ;;  %405 = vmatprep.mubr.msk.bf16.mxu0 %vm530_vm1, %v529_v12  ;;  %vm82_vm2 = vcmask 261120   ;;  %v256_v42 = vshrl.u32 %v255_v39, 7  ;;  %v258_v43 = vand.u32 127, %v255_v39  ;;  %s381_s3 = sshll.u32 %s534_s2, 4  ;;  %s382_s3 = int_to_ptr.vmem [resolvable:$true] %s381_s3 }
  0x1d   :  { %v49_v9 = vsel %vm48_vm0, %v47_v5, 0.0  ;;  %71 = vadd.xlane.f32.xlu0 %v70_v8  ;;  %v63_v10 = vsel %vm48_vm0, %v62_v4, 0.0  ;;  %v56_v11 = vsel %vm48_vm0, %v55_v7, 0.0  ;;  %vm277_vm4 = vcmask 9216   ;;  %s501_s28 = scalar_lea.vmem %s382_s3, 32  ;;  %p506_p11 = scmp.lt.s32.totalorder %s382_s3, %s382_s3 }
  0x1e   :  { %50 = vadd.xlane.f32.xlu1 %v49_v9  ;;  %vm260_vm3 = vcmp.eq.s32.totalorder %v256_v42, %v258_v43  ;;  %vm271_vm5 = vcmask 1024   ;;  %v531_v63 = vmov -1e+30   ;;  %vm373_vm6 = vcmask 9224   ;;  %p502_p10 = scmp.ne.s32.totalorder %s382_s3, %s501_s28  ;;  %p507_p12 = scmp.lt.s32.totalorder %s501_s28, %s501_s28 }
  0x1f   :  { %273 = vst.msk [vmem:[#allocation4] sm:$0x3] %vm271_vm5, %v531_v63  ;;  %272 = vst.msk [vmem:[#allocation2] sm:$0x3] %vm271_vm5, %v531_v63 }
  0x20   :  { %274 = vst.msk [vmem:[#allocation3] sm:$0x3] %vm271_vm5, %v529_v12  ;;  %275 = vst.msk [vmem:[#allocation5] sm:$0x3] %vm271_vm5, %v529_v12  ;;  %p508_p13 = por %p507_p12, %p506_p11 }
  0x21   :  { %64 = vadd.xlane.f32.xlu0 %v63_v10 }
  0x22   :  { %57 = vadd.xlane.f32.xlu1 %v56_v11  ;;  %p509_p0 = pnand %p508_p13, %p502_p10 }
  0x26   :  { %v276_v7 = vld [vmem:[#allocation2] sm:$0x3] }
  0xa6   :  { %v72_v13 = vpop.xlane.xlu0 %71 }
  0xa7   :  { %v51_v14 = vpop.xlane.xlu1 %50  ;;  %v73_v15 = vmax.f32 %v72_v13, 1e-16 }
  0xa8   :  { %v52_v16 = vmax.f32 %v51_v14, 1e-16 }
  0xa9   :  { %437 = vrsqrt.f32 %v73_v15 }
  0xaa   :  { %v65_v17 = vpop.xlane.xlu0 %64  ;;  %439 = vrsqrt.f32 %v52_v16 }
  0xab   :  { %v58_v18 = vpop.xlane.xlu1 %57  ;;  %v66_v19 = vmax.f32 %v65_v17, 1e-16 }
  0xac   :  { %v59_v20 = vmax.f32 %v58_v18, 1e-16 }
  0xad   :  { %441 = vrsqrt.f32 %v66_v19 }
  0xae   :  { %443 = vrsqrt.f32 %v59_v20 }
  0xb6   :  { %v438_v21 = vpop.eup %437 }
  0xb7   :  { %v75_v22 = vmul.f32 %v438_v21, %v46_v0  ;;  %v440_v23 = vpop.eup %439  ;;  %v532_v0 = vmov 0  }
  0xb8   :  { %v54_v29 = vmul.f32 %v440_v23, %v43_v2  ;;  %435 = vset.pattern.permute.xlu0 %v532_v0  ;;  %436 = vset.pattern.permute.xlu1 %v532_v0  ;;  %v313_v2 = vld [vmem:[#allocation4] sm:$0x3] }
  0xb9   :  { %v80_v24 = vmul.f32 2.0, %v75_v22 }
  0xba   :  { %v442_v25 = vpop.eup %441  ;;  %v76_v36 = vpack.c.bf16 %v54_v29, %v54_v29 }
  0xbb   :  { %v444_v26 = vpop.eup %443  ;;  %v81_v27 = vpack.c.bf16 %v80_v24, %v80_v24  ;;  %v68_v28 = vmul.f32 %v442_v25, %v45_v1 }
  0xbc   :  { %v61_v30 = vmul.f32 %v444_v26, %v44_v6 }
  0xbd   :  { %v130_v31 = vsel %vm82_vm2, %v81_v27, 0  ;;  %v78_v32 = vmul.f32 2.0, %v68_v28 }
  0xbe   :  { %410 = vmatpush3.bf16.xpose.msra.mxu1 %v130_v31  ;;  %v583_v33 = vmul.f32 %v61_v30, %v54_v29  ;;  %v77_v37 = vpack.c.bf16 %v61_v30, %v61_v30 }
  0xbf   :  { %v79_v34 = vpack.c.bf16 %v78_v32, %v78_v32  ;;  %421 = vmatprep.subr.bf16.mxu1 %v529_v12 }
  0xc0   :  { %v352_v27 = vsel %vm48_vm0, %v583_v33, 0.0 }
  0xc1   :  { %v87_v35 = vsel %vm82_vm2, %v79_v34, 0 }
  0xc2   :  { %404 = vmatpush3.bf16.xpose.msra.mxu0 %v87_v35 }
  0xc3   :  { %415 = vmatprep.subr.bf16.mxu0 %v529_v12 }
  0xc5   :  { %412 = vmatmul.mubr.msk.bf16.vlgmr.msra.gmra.mxu1 %vm82_vm2, %v76_v36 }
  0xc6   :  { %422 = vmatpush3.bf16.xpose.msra.mxu1 %v130_v31  ;;  %423 = vmatprep.mubr.msk.bf16.mxu1 %vm530_vm1, %v529_v12 }
  0xc9   :  { %406 = vmatmul.mubr.msk.bf16.vlgmr.msra.gmra.mxu0 %vm82_vm2, %v76_v36  ;;  %v343_v36 = vld [vmem:[#allocation5] sm:$0x3] }
  0xca   :  { %416 = vmatpush3.bf16.xpose.msra.mxu0 %v87_v35  ;;  %417 = vmatprep.mubr.msk.bf16.mxu0 %vm530_vm1, %v529_v12 }
  0xcd   :  { %424 = vmatmul.mubr.msk.bf16.vlgmr.msra.gmra.mxu1 %vm82_vm2, %v77_v37 }
  0xd1   :  { %418 = vmatmul.mubr.msk.bf16.vlgmr.msra.gmra.mxu0 %vm82_vm2, %v77_v37 }
 0x185   :  { %v596_v38 = vpop.f32.mrf.mxu1 }
 0x186   :  { %v281_v59 = vsel %vm277_vm4, %v596_v38, -inf }
 0x187   :  { %v413_v40 = vpop.f32.mrf.mxu1 }
 0x189   :  { %v123_v41 = vpop.f32.mrf.mxu0  ;;  %v169_v44 = vpop.f32.mrf.mxu1 }
 0x18a   :  { %v265_v56 = vsel %vm260_vm3, -1e+30, %v123_v41  ;;  %v307_v44 = vld [vmem:[#allocation3] sm:$0x3] }
 0x18b   :  { %v407_v45 = vpop.f32.mrf.mxu0  ;;  %v414_v46 = vpop.f32.mrf.mxu1  ;;  %v278_v61 = vsel %vm277_vm4, %v265_v56, -inf }
 0x18d   :  { %v126_v47 = vpop.f32.mrf.mxu0  ;;  %v249_v48 = vpop.f32.mrf.mxu1 }
 0x18e   :  { %v266_v49 = vsel %vm260_vm3, -1e+30, %v249_v48 }
 0x18f   :  { %v408_v50 = vpop.f32.mrf.mxu0  ;;  %v425_v51 = vpop.f32.mrf.mxu1  ;;  %v317_v52 = vsel %vm277_vm4, %v266_v49, -inf }
 0x190   :  { %318 = vmax.xlane.f32.xlu1 %v317_v52 }
 0x191   :  { %v209_v53 = vpop.f32.mrf.mxu0  ;;  %v252_v54 = vpop.f32.mrf.mxu1 }
 0x192   :  { %v314_v55 = vsel %vm277_vm4, %v209_v53, -inf }
 0x193   :  { %v426_v57 = vpop.f32.mrf.mxu1  ;;  %315 = vmax.xlane.f32.xlu0 %v314_v55  ;;  %v419_v58 = vpop.f32.mrf.mxu0 }
 0x194   :  { %282 = vmax.xlane.f32.xlu1 %v281_v59 }
 0x195   :  { %v212_v60 = vpop.f32.mrf.mxu0 }
 0x197   :  { %279 = vmax.xlane.f32.xlu0 %v278_v61  ;;  %v420_v62 = vpop.f32.mrf.mxu0 }
 0x219   :  { %v319_v1 = vpop.xlane.xlu1 %318 }
 0x21c   :  { %v316_v3 = vpop.xlane.xlu0 %315 }
 0x21d   :  { %v320_v4 = vmax.f32 %v316_v3, %v319_v1  ;;  %v283_v6 = vpop.xlane.xlu1 %282 }
 0x21f   :  { %v321_v5 = vmax.f32 %v313_v2, %v320_v4 }
 0x220   :  { %v280_v8 = vpop.xlane.xlu0 %279 }
 0x221   :  { %v340_v9 = vsub.f32 %v313_v2, %v321_v5  ;;  %347 = vst.msk [vmem:[#allocation4] sm:$0x3] %vm271_vm5, %v321_v5  ;;  %v284_v10 = vmax.f32 %v280_v8, %v283_v6  ;;  %324 = vperm.xlu0 %435, %v321_v5  }
 0x223   :  { %v285_v11 = vmax.f32 %v276_v7, %v284_v10  ;;  %v341_v32 = vmul.f32 1.442695, %v340_v9 }
 0x225   :  { %v304_v13 = vsub.f32 %v276_v7, %v285_v11  ;;  %312 = vst.msk [vmem:[#allocation2] sm:$0x3] %vm271_vm5, %v285_v11  ;;  %288 = vperm.xlu1 %436, %v285_v11  }
 0x227   :  { %v305_v34 = vmul.f32 1.442695, %v304_v13 }
 0x22c   :  { %v356_v59 = vld [vmem:[#allocation2] sm:$0x3] }
 0x29c   :  { %v325_v12 = vpop.permute.xlu0 %324 }
 0x29d   :  { %v327_v14 = vsub.f32 %v209_v53, %v325_v12  ;;  %v333_v15 = vsub.f32 %v266_v49, %v325_v12  ;;  %v361_v53 = vld [vmem:[#allocation4] sm:$0x3] }
 0x29f   :  { %v328_v16 = vmul.f32 1.442695, %v327_v14  ;;  %v334_v17 = vmul.f32 1.442695, %v333_v15 }
 0x2a0   :  { %v289_v18 = vpop.permute.xlu1 %288 }
 0x2a1   :  { %445 = vpow2.f32 %v328_v16  ;;  %v291_v19 = vsub.f32 %v265_v56, %v289_v18  ;;  %v297_v21 = vsub.f32 %v596_v38, %v289_v18 }
 0x2a2   :  { %447 = vpow2.f32 %v334_v17 }
 0x2a3   :  { %v292_v20 = vmul.f32 1.442695, %v291_v19  ;;  %v298_v22 = vmul.f32 1.442695, %v297_v21 }
 0x2a5   :  { %449 = vpow2.f32 %v292_v20 }
 0x2a6   :  { %451 = vpow2.f32 %v298_v22 }
 0x2a7   :  { %453 = vpow2.f32 %v341_v32 }
 0x2a8   :  { %455 = vpow2.f32 %v305_v34 }
 0x2ae   :  { %v446_v23 = vpop.eup %445 }
 0x2af   :  { %v448_v24 = vpop.eup %447  ;;  %v330_v25 = vsel %vm277_vm4, %v446_v23, 0.0 }
 0x2b0   :  { %v336_v26 = vsel %vm277_vm4, %v448_v24, 0.0  ;;  %331 = vadd.xlane.f32.xlu1 %v330_v25 }
 0x2b1   :  { %337 = vadd.xlane.f32.xlu0 %v336_v26 }
 0x2b2   :  { %v450_v28 = vpop.eup %449 }
 0x2b3   :  { %v294_v29 = vsel %vm277_vm4, %v450_v28, 0.0  ;;  %v452_v30 = vpop.eup %451 }
 0x2b4   :  { %353 = vadd.xlane.f32.xlu1 %v352_v27  ;;  %v300_v31 = vsel %vm277_vm4, %v452_v30, 0.0  ;;  %v454_v35 = vpop.eup %453 }
 0x2b5   :  { %v344_v39 = vmul.f32 %v454_v35, %v343_v36  ;;  %v456_v43 = vpop.eup %455 }
 0x2b6   :  { %v308_v47 = vmul.f32 %v456_v43, %v307_v44 }
 0x2b8   :  { %295 = vadd.xlane.f32.xlu1 %v294_v29 }
 0x2bc   :  { %301 = vadd.xlane.f32.xlu1 %v300_v31 }
 0x339   :  { %v332_v37 = vpop.xlane.xlu1 %331 }
 0x33a   :  { %v338_v38 = vpop.xlane.xlu0 %337 }
 0x33b   :  { %v339_v40 = vadd.f32 %v338_v38, %v332_v37 }
 0x33d   :  { %v345_v33 = vadd.f32 %v344_v39, %v339_v40  ;;  %v354_v41 = vpop.xlane.xlu1 %353 }
 0x33e   :  { %v355_v55 = vmul.f32 2.0, %v354_v41 }
 0x33f   :  { %346 = vst.msk [vmem:[#allocation5] sm:$0x3] %vm271_vm5, %v345_v33 }
 0x341   :  { %v296_v42 = vpop.xlane.xlu1 %295 }
 0x345   :  { %v302_v45 = vpop.xlane.xlu1 %301 }
 0x346   :  { %v362_v46 = vld [vmem:[#allocation5] sm:$0x3]  ;;  %v303_v48 = vadd.f32 %v302_v45, %v296_v42 }
 0x347   :  { %457 = vlog2.f32 %v362_v46 }
 0x348   :  { %v309_v49 = vadd.f32 %v308_v47, %v303_v48 }
 0x34a   :  { %311 = vst.msk [vmem:[#allocation3] sm:$0x3] %vm271_vm5, %v309_v49 }
 0x351   :  { %v357_v50 = vld [vmem:[#allocation3] sm:$0x3] }
 0x352   :  { %459 = vlog2.f32 %v357_v50 }
 0x354   :  { %v458_v51 = vpop.eup %457 }
 0x355   :  { %v364_v52 = vmul.f32 0.6931472, %v458_v51 }
 0x357   :  { %v365_v54 = vadd.f32 %v364_v52, %v361_v53 }
 0x359   :  { %v368_v56 = vsub.f32 %v365_v54, %v355_v55 }
 0x35b   :  { %370 = vrot.lane.b32.xlu1 %v368_v56, %s533_s1 }
 0x35f   :  { %v460_v57 = vpop.eup %459 }
 0x360   :  { %v359_v58 = vmul.f32 0.6931472, %v460_v57 }
 0x362   :  { %v360_v60 = vadd.f32 %v359_v58, %v356_v59 }
 0x364   :  { %v366_v61 = vsub.f32 %v360_v60, %v355_v55 }
 0x366   :  { %367 = vst.msk [vmem:[#allocation11] sm:$0x3] %vm271_vm5, %v366_v61 }
 0x3cd   :  { %v371_v62 = vpop.permute.xlu1 %370 }
 0x3ce   :  { %374 = vst.msk [vmem:[#allocation11] sm:$0x3] %vm373_vm6, %v371_v62 }
 0x3cf   :  { %512 = shalt.err (!%p509_p0)
}
 0x3d0   :  { %384 = dma.vmem_to_hbm [thread:$0]  %s382_s3, 32, %s628_s4, [#allocation8]  }
 0x3d1   :  { %525 = dma.done.wait [#allocation8], 32  }
 0x3d2   :  { %526 = vsyncadd [#allocation8], 4294967264 }
 0x3d3   :  { %388 = vsyncpa [#allocation7], 1 }
 0x3d4   :  { %389 = vsyncpa [#allocation10], 1 }
 0x3d5   :  { %390 = vsyncpa [#allocation8], 1 }

</bundles_post_ra>
